<compile_context>
chip_gen: v6e
topology: v6e:2x2x1
jax: 0.10.0
libtpu: 0.0.40
codegen_flags: <defaults>
</compile_context>

<pallas_src>
import functools

import jax
import jax.numpy as jnp
from jax.experimental import pallas as pl
from jax.experimental.pallas import tpu as pltpu


def _round_up(n: int, m: int) -> int:
    return ((n + m - 1) // m) * m


def _sublane_multiple(dtype) -> int:
    # 4-byte dtypes pack 8 rows per vreg, 2-byte pack 16, 1-byte pack 32.
    return max(8, 32 // jnp.dtype(dtype).itemsize)


def _resblock_kernel(x_ref, w13_ref, b1_ref, w2_ref, b23_ref, o_ref, *,
                     activation: str):
    if activation == "relu":
        act = lambda v: jnp.maximum(v, 0.0)
    elif activation == "tanh":
        act = jnp.tanh
    else:
        raise ValueError(f"unsupported activation: {activation}")

    out_p = b1_ref.shape[-1]                  # static padded output width
    x = x_ref[...]
    if x.dtype != w13_ref.dtype:              # keep one consistent MXU path
        x = x.astype(w13_ref.dtype)

    # One MXU call for both x-consuming matmuls: x @ [W1 | W3], f32 accumulate.
    xw = jnp.dot(x, w13_ref[...], preferred_element_type=jnp.float32)

    y = act(xw[:, :out_p] + b1_ref[...])      # act(x @ W1 + b1)
    proj = xw[:, out_p:]                      # x @ W3 (its b3 folded into b23)

    # z = act(y @ W2 + x @ W3 + (b2 + b3))
    z = (jnp.dot(y.astype(w2_ref.dtype), w2_ref[...],
                 preferred_element_type=jnp.float32)
         + proj + b23_ref[...])
    o_ref[...] = act(z).astype(o_ref.dtype)


def prepare_resblock_params(w1, b1, w2, b2, w3, b3, *, lane=128,
                            weight_dtype=None):
    """One-time parameter preprocessing (call at init, NOT per forward).

    Pads feature dims to a multiple of `lane`, fuses [W1 | W3], folds b3 into
    b2, and optionally casts the big weight matrices to `weight_dtype`
    (e.g. bf16 for the fast MXU path; biases stay f32).
    Weights are expected in [in, out] layout (torch weight transposed).
    """
    in_dim, out_dim = w1.shape
    assert w3.shape == (in_dim, out_dim)
    assert w2.shape == (out_dim, out_dim)
    in_p = _round_up(in_dim, lane)
    out_p = _round_up(out_dim, lane)

    def pad2(a, rows, cols):
        if a.shape == (rows, cols):
            return a
        return jnp.pad(a, ((0, rows - a.shape[0]), (0, cols - a.shape[1])))

    w13 = jnp.concatenate([pad2(w1, in_p, out_p), pad2(w3, in_p, out_p)],
                          axis=1)                               # [in_p, 2*out_p]
    w2_p = pad2(w2, out_p, out_p)
    if weight_dtype is not None:
        w13 = w13.astype(weight_dtype)
        w2_p = w2_p.astype(weight_dtype)
    b1_p = jnp.pad(b1, (0, out_p - out_dim)).astype(jnp.float32).reshape(1, out_p)
    b23_p = (jnp.pad(b2 + b3, (0, out_p - out_dim))
             .astype(jnp.float32).reshape(1, out_p))
    return {"w13": w13, "b1": b1_p, "w2": w2_p, "b23": b23_p,
            "in_dim": in_dim, "out_dim": out_dim, "in_p": in_p, "out_p": out_p}


_WEIGHT_SINGLE_BUFFER_OK = None   # cached: does this JAX accept pl.Buffered(1)?


def resblock_pallas(x, params, *, activation="relu", tm=256,
                    vmem_limit_bytes=None):
    """Forward pass. x: [B, in_dim]; params: from prepare_resblock_params()."""
    B, in_dim = x.shape
    assert in_dim == params["in_dim"], "x feature dim mismatch"
    w13, b1_p = params["w13"], params["b1"]
    w2_p, b23_p = params["w2"], params["b23"]
    in_p, out_p, out_dim = params["in_p"], params["out_p"], params["out_dim"]

    sub = _sublane_multiple(x.dtype)
    # Big batches: large MXU-aligned row tile.  Small batches: shrink the tile
    # to the sublane-aligned padded batch so we never compute garbage rows.
    tm_eff = min(_round_up(tm, sub), _round_up(B, sub))
    b_pad = _round_up(B, tm_eff)
    # Keep >= 2 grid steps when a single large tile would cover the batch, so
    # v7x's two TensorCores both get work (no-op for small batches).
    if b_pad // tm_eff == 1 and tm_eff >= 256:
        tm_eff = _round_up(tm_eff // 2, sub)
        b_pad = _round_up(B, tm_eff)
    grid = (b_pad // tm_eff,)

    # Only pad the activations when actually needed (padding is an extra
    # activation-sized HBM pass around a memory-bound kernel).
    if (B, in_dim) != (b_pad, in_p):
        x_in = jnp.pad(x, ((0, b_pad - B), (0, in_p - in_dim)))
    else:
        x_in = x

    x_isz = jnp.dtype(x.dtype).itemsize
    w_isz = jnp.dtype(w13.dtype).itemsize
    if vmem_limit_bytes is None:
        # Conservative (double-buffered) estimate of resident VMEM + headroom.
        w_bytes = (in_p * 2 * out_p + out_p * out_p) * w_isz * 2
        bias_bytes = 2 * 8 * out_p * 4 * 2
        io_bytes = 2 * tm_eff * (in_p + out_p) * x_isz
        inter_bytes = 3 * tm_eff * 2 * out_p * 4      # xw / y / z f32 temps
        need = w_bytes + bias_bytes + io_bytes + inter_bytes
        vmem_limit_bytes = int(min(max(2 * need, 16 * 1024 * 1024),
                                   64 * 1024 * 1024))

    flops = 2 * b_pad * (in_p * 2 * out_p + out_p * out_p)
    transcendentals = 2 * b_pad * out_p if activation == "tanh" else 0
    bytes_accessed = (x_in.size * x_isz
                      + (w13.size + w2_p.size) * w_isz
                      + (b1_p.size + b23_p.size) * 4
                      + b_pad * out_p * x_isz)
    cost = pl.CostEstimate(flops=int(flops),
                           transcendentals=int(transcendentals),
                           bytes_accessed=int(bytes_accessed))

    kernel = functools.partial(_resblock_kernel, activation=activation)

    def run(single_buffer_weights: bool):
        # Grid-invariant weights/biases do not need double buffering.
        wkw = ({"pipeline_mode": pl.Buffered(1)} if single_buffer_weights
               else {})
        in_specs = [
            pl.BlockSpec((tm_eff, in_p), lambda i: (i, 0)),            # x tile
            pl.BlockSpec((in_p, 2 * out_p), lambda i: (0, 0), **wkw),  # [W1|W3]
            pl.BlockSpec((1, out_p), lambda i: (0, 0), **wkw),         # b1
            pl.BlockSpec((out_p, out_p), lambda i: (0, 0), **wkw),     # W2
            pl.BlockSpec((1, out_p), lambda i: (0, 0), **wkw),         # b2+b3
        ]
        return pl.pallas_call(
            kernel,
            out_shape=jax.ShapeDtypeStruct((b_pad, out_p), x.dtype),
            grid_spec=pltpu.PrefetchScalarGridSpec(
                num_scalar_prefetch=0,
                grid=grid,
                in_specs=in_specs,
                out_specs=pl.BlockSpec((tm_eff, out_p), lambda i: (i, 0)),
            ),
            compiler_params=pltpu.CompilerParams(
                dimension_semantics=("parallel",),
                vmem_limit_bytes=vmem_limit_bytes),
            cost_estimate=cost,
        )(x_in, w13, b1_p, w2_p, b23_p)

    global _WEIGHT_SINGLE_BUFFER_OK
    if _WEIGHT_SINGLE_BUFFER_OK is None:
        try:
            out_padded = run(True)
            _WEIGHT_SINGLE_BUFFER_OK = True
        except Exception:
            # This JAX build rejects Buffered(1) on pallas_call pipelining;
            # fall back to default double buffering (correct, more VMEM).
            _WEIGHT_SINGLE_BUFFER_OK = False
            out_padded = run(False)
    else:
        out_padded = run(_WEIGHT_SINGLE_BUFFER_OK)

    if (b_pad, out_p) != (B, out_dim):
        out_padded = out_padded[:B, :out_dim]
    return out_padded


def resblock_ref(x, w1, b1, w2, b2, w3, b3, activation="relu"):
    act = (lambda v: jnp.maximum(v, 0.0)) if activation == "relu" else jnp.tanh
    y = act(x @ w1 + b1)
    return act(y @ w2 + b2 + x @ w3 + b3)


if __name__ == "__main__":
    # Small shapes consistent with the module: batch=16, input_dim=32, output_dim=32
    batch, input_dim, output_dim = 16, 32, 32

    key = jax.random.PRNGKey(0)
    kx, k1, k2, k3, k4, k5, k6 = jax.random.split(key, 7)

    x = jax.random.normal(kx, (batch, input_dim), dtype=jnp.float32)

    # Deterministic parameter init (PyTorch nn.Linear-style uniform bounds),
    # stored directly in [in, out] layout (i.e. W^T of the torch weight).
    def linear_params(kw, kb, fan_in, fan_out):
        bound = 1.0 / jnp.sqrt(fan_in)
        w = jax.random.uniform(kw, (fan_in, fan_out), jnp.float32, -bound, bound)
        b = jax.random.uniform(kb, (fan_out,), jnp.float32, -bound, bound)
        return w, b

    w1, b1 = linear_params(k1, k2, input_dim, output_dim)   # inp_transform
    w2, b2 = linear_params(k3, k4, output_dim, output_dim)  # out_transform
    w3, b3 = linear_params(k5, k6, input_dim, output_dim)   # inp_projection

    # One-time parameter preprocessing (hoisted out of the forward path).
    params_f32 = prepare_resblock_params(w1, b1, w2, b2, w3, b3)
    params_bf16 = prepare_resblock_params(w1, b1, w2, b2, w3, b3,
                                          weight_dtype=jnp.bfloat16)

    for activation in ("relu", "tanh"):
        ref = resblock_ref(x, w1, b1, w2, b2, w3, b3, activation=activation)

        out = jax.block_until_ready(
            resblock_pallas(x, params_f32, activation=activation))
        assert out.shape == (batch, output_dim)
        assert jnp.allclose(out, ref, atol=1e-5, rtol=1e-5), \
            f"f32 mismatch vs reference ({activation})"

        out_bf16 = jax.block_until_ready(
            resblock_pallas(x, params_bf16, activation=activation))
        assert out_bf16.shape == (batch, output_dim)
        assert jnp.allclose(out_bf16, ref, atol=5e-2, rtol=5e-2), \
            f"bf16-weight mismatch vs reference ({activation})"

    print("KERNEL_OK")
</pallas_src>

<mosaic_0001>
module attributes {stable_mosaic.version = 11 : i64} {
  func.func @_resblock_kernel(%arg0: i32, %arg1: memref<16x128xf32, #tpu.memory_space<vmem>>, %arg2: memref<128x256xf32, #tpu.memory_space<vmem>>, %arg3: memref<1x128xf32, #tpu.memory_space<vmem>>, %arg4: memref<128x128xf32, #tpu.memory_space<vmem>>, %arg5: memref<1x128xf32, #tpu.memory_space<vmem>>, %arg6: memref<16x128xf32, #tpu.memory_space<vmem>>) attributes {dimension_semantics = [#tpu.dimension_semantics<parallel>], iteration_bounds = array<i64: 1>, scalar_prefetch = 0 : i64, scratch_operands = 0 : i64, tpu.core_type = #tpu.core_type<tc>, window_params = [{transform_indices = @transform_0, window_bounds = array<i64: 16, 128>}, {pipeline_mode = #tpu.pipeline_mode<synchronous>, transform_indices = @transform_1, window_bounds = array<i64: 128, 256>}, {pipeline_mode = #tpu.pipeline_mode<synchronous>, transform_indices = @transform_2, window_bounds = array<i64: 1, 128>}, {pipeline_mode = #tpu.pipeline_mode<synchronous>, transform_indices = @transform_3, window_bounds = array<i64: 128, 128>}, {pipeline_mode = #tpu.pipeline_mode<synchronous>, transform_indices = @transform_4, window_bounds = array<i64: 1, 128>}, {transform_indices = @transform_5, window_bounds = array<i64: 16, 128>}]} {
    %c0 = arith.constant 0 : index
    %c0_0 = arith.constant 0 : index
    %0 = vector.load %arg1[%c0, %c0_0] : memref<16x128xf32, #tpu.memory_space<vmem>>, vector<16x128xf32>
    %c0_1 = arith.constant 0 : index
    %c0_2 = arith.constant 0 : index
    %1 = vector.load %arg2[%c0_1, %c0_2] : memref<128x256xf32, #tpu.memory_space<vmem>>, vector<128x256xf32>
    %cst = arith.constant dense<0.000000e+00> : vector<16x256xf32>
    %2 = tpu.matmul %0, %1, %cst {dimension_numbers = #tpu.dot_dimension_numbers<[1], [0], [0], [1], [0, 0, 1, 1], [], []>} : vector<16x128xf32>, vector<128x256xf32>, vector<16x256xf32> -> vector<16x256xf32>
    %3 = vector.extract_strided_slice %2 {offsets = [0, 0], sizes = [16, 128], strides = [1, 1]} : vector<16x256xf32> to vector<16x128xf32>
    %c0_3 = arith.constant 0 : index
    %c0_4 = arith.constant 0 : index
    %4 = vector.load %arg3[%c0_3, %c0_4] : memref<1x128xf32, #tpu.memory_space<vmem>>, vector<1x128xf32>
    %5 = vector.broadcast %4 : vector<1x128xf32> to vector<16x128xf32>
    %6 = arith.addf %3, %5 : vector<16x128xf32>
    %cst_5 = arith.constant 0.000000e+00 : f32
    %7 = vector.broadcast %cst_5 : f32 to vector<16x128xf32>
    %8 = arith.maximumf %6, %7 : vector<16x128xf32>
    %9 = vector.extract_strided_slice %2 {offsets = [0, 128], sizes = [16, 128], strides = [1, 1]} : vector<16x256xf32> to vector<16x128xf32>
    %c0_6 = arith.constant 0 : index
    %c0_7 = arith.constant 0 : index
    %10 = vector.load %arg4[%c0_6, %c0_7] : memref<128x128xf32, #tpu.memory_space<vmem>>, vector<128x128xf32>
    %cst_8 = arith.constant dense<0.000000e+00> : vector<16x128xf32>
    %11 = tpu.matmul %8, %10, %cst_8 {dimension_numbers = #tpu.dot_dimension_numbers<[1], [0], [0], [1], [0, 0, 1, 1], [], []>} : vector<16x128xf32>, vector<128x128xf32>, vector<16x128xf32> -> vector<16x128xf32>
    %12 = arith.addf %11, %9 : vector<16x128xf32>
    %c0_9 = arith.constant 0 : index
    %c0_10 = arith.constant 0 : index
    %13 = vector.load %arg5[%c0_9, %c0_10] : memref<1x128xf32, #tpu.memory_space<vmem>>, vector<1x128xf32>
    %14 = vector.broadcast %13 : vector<1x128xf32> to vector<16x128xf32>
    %15 = arith.addf %12, %14 : vector<16x128xf32>
    %cst_11 = arith.constant 0.000000e+00 : f32
    %16 = vector.broadcast %cst_11 : f32 to vector<16x128xf32>
    %17 = arith.maximumf %15, %16 : vector<16x128xf32>
    %c0_12 = arith.constant 0 : index
    %c0_13 = arith.constant 0 : index
    %18 = vector.load %arg6[%c0_12, %c0_13] : memref<16x128xf32, #tpu.memory_space<vmem>>, vector<16x128xf32>
    tpu.vector_store %arg6[%c0_12, %c0_13], %17 {strides = array<i32>} : memref<16x128xf32, #tpu.memory_space<vmem>>, vector<16x128xf32>,
    return
  }
  func.func @transform_0(%arg0: i32) -> (i32, i32) {
    %c0_i32 = arith.constant 0 : i32
    %c0_i32_0 = arith.constant 0 : i32
    return %arg0, %c0_i32 : i32, i32
  }
  func.func @transform_1(%arg0: i32) -> (i32, i32) {
    %c0_i32 = arith.constant 0 : i32
    %c0_i32_0 = arith.constant 0 : i32
    %c0_i32_1 = arith.constant 0 : i32
    return %c0_i32, %c0_i32_0 : i32, i32
  }
  func.func @transform_2(%arg0: i32) -> (i32, i32) {
    %c0_i32 = arith.constant 0 : i32
    %c0_i32_0 = arith.constant 0 : i32
    %c0_i32_1 = arith.constant 0 : i32
    return %c0_i32, %c0_i32_0 : i32, i32
  }
  func.func @transform_3(%arg0: i32) -> (i32, i32) {
    %c0_i32 = arith.constant 0 : i32
    %c0_i32_0 = arith.constant 0 : i32
    %c0_i32_1 = arith.constant 0 : i32
    return %c0_i32, %c0_i32_0 : i32, i32
  }
  func.func @transform_4(%arg0: i32) -> (i32, i32) {
    %c0_i32 = arith.constant 0 : i32
    %c0_i32_0 = arith.constant 0 : i32
    %c0_i32_1 = arith.constant 0 : i32
    return %c0_i32, %c0_i32_0 : i32, i32
  }
  func.func @transform_5(%arg0: i32) -> (i32, i32) {
    %c0_i32 = arith.constant 0 : i32
    %c0_i32_0 = arith.constant 0 : i32
    return %arg0, %c0_i32 : i32, i32
  }
}

module attributes {stable_mosaic.version = 11 : i64} {
  func.func @_resblock_kernel(%arg0: i32, %arg1: memref<16x128xf32, #tpu.memory_space<vmem>>, %arg2: memref<128x256xf32, #tpu.memory_space<vmem>>, %arg3: memref<1x128xf32, #tpu.memory_space<vmem>>, %arg4: memref<128x128xf32, #tpu.memory_space<vmem>>, %arg5: memref<1x128xf32, #tpu.memory_space<vmem>>, %arg6: memref<16x128xf32, #tpu.memory_space<vmem>>) attributes {dimension_semantics = [#tpu.dimension_semantics<parallel>], iteration_bounds = array<i64: 1>, scalar_prefetch = 0 : i64, scratch_operands = 0 : i64, tpu.core_type = #tpu.core_type<tc>, window_params = [{transform_indices = @transform_0, window_bounds = array<i64: 16, 128>}, {pipeline_mode = #tpu.pipeline_mode<synchronous>, transform_indices = @transform_1, window_bounds = array<i64: 128, 256>}, {pipeline_mode = #tpu.pipeline_mode<synchronous>, transform_indices = @transform_2, window_bounds = array<i64: 1, 128>}, {pipeline_mode = #tpu.pipeline_mode<synchronous>, transform_indices = @transform_3, window_bounds = array<i64: 128, 128>}, {pipeline_mode = #tpu.pipeline_mode<synchronous>, transform_indices = @transform_4, window_bounds = array<i64: 1, 128>}, {transform_indices = @transform_5, window_bounds = array<i64: 16, 128>}]} {
    %c0 = arith.constant 0 : index
    %c0_0 = arith.constant 0 : index
    %0 = vector.load %arg1[%c0, %c0_0] : memref<16x128xf32, #tpu.memory_space<vmem>>, vector<16x128xf32>
    %c0_1 = arith.constant 0 : index
    %c0_2 = arith.constant 0 : index
    %1 = vector.load %arg2[%c0_1, %c0_2] : memref<128x256xf32, #tpu.memory_space<vmem>>, vector<128x256xf32>
    %cst = arith.constant dense<0.000000e+00> : vector<16x256xf32>
    %2 = tpu.matmul %0, %1, %cst {dimension_numbers = #tpu.dot_dimension_numbers<[1], [0], [0], [1], [0, 0, 1, 1], [], []>} : vector<16x128xf32>, vector<128x256xf32>, vector<16x256xf32> -> vector<16x256xf32>
    %3 = vector.extract_strided_slice %2 {offsets = [0, 0], sizes = [16, 128], strides = [1, 1]} : vector<16x256xf32> to vector<16x128xf32>
    %c0_3 = arith.constant 0 : index
    %c0_4 = arith.constant 0 : index
    %4 = vector.load %arg3[%c0_3, %c0_4] : memref<1x128xf32, #tpu.memory_space<vmem>>, vector<1x128xf32>
    %5 = vector.broadcast %4 : vector<1x128xf32> to vector<16x128xf32>
    %6 = arith.addf %3, %5 : vector<16x128xf32>
    %cst_5 = arith.constant 0.000000e+00 : f32
    %7 = vector.broadcast %cst_5 : f32 to vector<16x128xf32>
    %8 = arith.maximumf %6, %7 : vector<16x128xf32>
    %9 = vector.extract_strided_slice %2 {offsets = [0, 128], sizes = [16, 128], strides = [1, 1]} : vector<16x256xf32> to vector<16x128xf32>
    %c0_6 = arith.constant 0 : index
    %c0_7 = arith.constant 0 : index
    %10 = vector.load %arg4[%c0_6, %c0_7] : memref<128x128xf32, #tpu.memory_space<vmem>>, vector<128x128xf32>
    %cst_8 = arith.constant dense<0.000000e+00> : vector<16x128xf32>
    %11 = tpu.matmul %8, %10, %cst_8 {dimension_numbers = #tpu.dot_dimension_numbers<[1], [0], [0], [1], [0, 0, 1, 1], [], []>} : vector<16x128xf32>, vector<128x128xf32>, vector<16x128xf32> -> vector<16x128xf32>
    %12 = arith.addf %11, %9 : vector<16x128xf32>
    %c0_9 = arith.constant 0 : index
    %c0_10 = arith.constant 0 : index
    %13 = vector.load %arg5[%c0_9, %c0_10] : memref<1x128xf32, #tpu.memory_space<vmem>>, vector<1x128xf32>
    %14 = vector.broadcast %13 : vector<1x128xf32> to vector<16x128xf32>
    %15 = arith.addf %12, %14 : vector<16x128xf32>
    %cst_11 = arith.constant 0.000000e+00 : f32
    %16 = vector.broadcast %cst_11 : f32 to vector<16x128xf32>
    %17 = arith.maximumf %15, %16 : vector<16x128xf32>
    %c0_12 = arith.constant 0 : index
    %c0_13 = arith.constant 0 : index
    %18 = vector.load %arg6[%c0_12, %c0_13] : memref<16x128xf32, #tpu.memory_space<vmem>>, vector<16x128xf32>
    tpu.vector_store %arg6[%c0_12, %c0_13], %17 {strides = array<i32>} : memref<16x128xf32, #tpu.memory_space<vmem>>, vector<16x128xf32>,
    return
  }
  func.func @transform_0(%arg0: i32) -> (i32, i32) {
    %c0_i32 = arith.constant 0 : i32
    %c0_i32_0 = arith.constant 0 : i32
    return %arg0, %c0_i32 : i32, i32
  }
  func.func @transform_1(%arg0: i32) -> (i32, i32) {
    %c0_i32 = arith.constant 0 : i32
    %c0_i32_0 = arith.constant 0 : i32
    %c0_i32_1 = arith.constant 0 : i32
    return %c0_i32, %c0_i32_0 : i32, i32
  }
  func.func @transform_2(%arg0: i32) -> (i32, i32) {
    %c0_i32 = arith.constant 0 : i32
    %c0_i32_0 = arith.constant 0 : i32
    %c0_i32_1 = arith.constant 0 : i32
    return %c0_i32, %c0_i32_0 : i32, i32
  }
  func.func @transform_3(%arg0: i32) -> (i32, i32) {
    %c0_i32 = arith.constant 0 : i32
    %c0_i32_0 = arith.constant 0 : i32
    %c0_i32_1 = arith.constant 0 : i32
    return %c0_i32, %c0_i32_0 : i32, i32
  }
  func.func @transform_4(%arg0: i32) -> (i32, i32) {
    %c0_i32 = arith.constant 0 : i32
    %c0_i32_0 = arith.constant 0 : i32
    %c0_i32_1 = arith.constant 0 : i32
    return %c0_i32, %c0_i32_0 : i32, i32
  }
  func.func @transform_5(%arg0: i32) -> (i32, i32) {
    %c0_i32 = arith.constant 0 : i32
    %c0_i32_0 = arith.constant 0 : i32
    return %arg0, %c0_i32 : i32, i32
  }
}

</mosaic_0001>

<bundles_post_ra>
// kernel: tpu_custom_call.1
= control target key start
LH: loop header
LB: loop body
LE: loop exit
PB: predicated region body
PF: predicated region fallthrough
CT: control target
= control target key end

     0   :  { %10 = vsyncpa [#allocation3], 0  ;;  %s524_s0 = inlined_call_operand.hbm [shape: f32[16,128], index: 0, kind: input, shape index: {}]   ;;  %s525_s1 = inlined_call_operand.hbm [shape: f32[128,256], index: 1, kind: input, shape index: {}]   ;;  %s526_s2 = inlined_call_operand.vmem [shape: f32[1,128], index: 2, kind: input, shape index: {}]   ;;  %s527_s3 = inlined_call_operand.hbm [shape: f32[128,128], index: 3, kind: input, shape index: {}]   ;;  %s528_s4 = inlined_call_operand.vmem [shape: f32[1,128], index: 4, kind: input, shape index: {}]   ;;  %s529_s5 = inlined_call_operand.hbm [shape: f32[16,128], index: 5, kind: output, shape index: {}]  }
   0x1   :  { %11 = vsyncpa [#allocation6], 0 }
   0x2   :  { %12 = vsyncpa [#allocation4], 0  ;;  %s456_s18 = smov [#allocation5]  }
   0x3   :  { %s30_s19 = sshll.u32 %s456_s18, 4  ;;  %s31_s19 = int_to_ptr.vmem [resolvable:$true] %s30_s19 }
   0x4   :  { %s378_s20 = scalar_lea.vmem %s31_s19, 4096  ;;  %p383_p1 = scmp.lt.s32.totalorder %s31_s19, %s31_s19 }
   0x5   :  { %p379_p0 = scmp.ne.s32.totalorder %s31_s19, %s378_s20  ;;  %p384_p2 = scmp.lt.s32.totalorder %s378_s20, %s378_s20 }
   0x7   :  { %p385_p3 = por %p384_p2, %p383_p1 }
   0x9   :  { %p386_p4 = pnand %p385_p3, %p379_p0 }
   0xb   :  { %389 = shalt.err (!%p386_p4)
}
   0xc   :  { %s457_s21 = smov 256   ;;  %s458_s22 = smov 16  }
   0xd   :  { %36 = dma.hbm_to_vmem [thread:$0]  %s525_s1, 4096, %s31_s19, [#allocation6], %s457_s21, %s457_s21, %s458_s22  }
   0xe   :  { %s459_s25 = smov [#allocation2]  }
   0xf   :  { %s18_s26 = sshll.u32 %s459_s25, 4  ;;  %s19_s26 = int_to_ptr.vmem [resolvable:$true] %s18_s26 }
  0x10   :  { %s398_s27 = scalar_lea.vmem %s19_s26, 256  ;;  %p403_p6 = scmp.lt.s32.totalorder %s19_s26, %s19_s26 }
  0x11   :  { %p399_p5 = scmp.ne.s32.totalorder %s19_s26, %s398_s27  ;;  %p404_p7 = scmp.lt.s32.totalorder %s398_s27, %s398_s27 }
  0x13   :  { %p405_p8 = por %p404_p7, %p403_p6 }
  0x15   :  { %p406_p9 = pnand %p405_p8, %p399_p5 }
  0x17   :  { %409 = shalt.err (!%p406_p9)
}
  0x18   :  { %s460_s28 = smov 128   ;;  %s461_s29 = smov 8  }
  0x19   :  { %24 = dma.hbm_to_vmem [thread:$0]  %s524_s0, 256, %s19_s26, [#allocation3], %s460_s28, %s460_s28, %s461_s29  }
  0x1a   :  { %s462_s1 = smov [#allocation7]  }
  0x1b   :  { %s44_s7 = sshll.u32 %s462_s1, 4  ;;  %s45_s7 = int_to_ptr.vmem [resolvable:$true] %s44_s7 }
  0x1c   :  { %s418_s8 = scalar_lea.vmem %s45_s7, 2048  ;;  %p423_p11 = scmp.lt.s32.totalorder %s45_s7, %s45_s7 }
  0x1d   :  { %p419_p10 = scmp.ne.s32.totalorder %s45_s7, %s418_s8  ;;  %p424_p12 = scmp.lt.s32.totalorder %s418_s8, %s418_s8 }
  0x1f   :  { %p425_p13 = por %p424_p12, %p423_p11 }
  0x21   :  { %p426_p0 = pnand %p425_p13, %p419_p10 }
  0x23   :  { %429 = shalt.err (!%p426_p0)
}
  0x24   :  { %50 = dma.hbm_to_vmem [thread:$0]  %s527_s3, 2048, %s45_s7, [#allocation6], %s460_s28, %s460_s28, %s461_s29  }
  0x25   :  { %450 = dma.done.wait [#allocation3], 256  }
  0x26   :  { %451 = vsyncadd [#allocation3], 4294967040 }
  0x27   :  { %452 = dma.done.wait [#allocation6], 6144  }
  0x28   :  { %453 = vsyncadd [#allocation6], 4294961152  ;;  %v463_v0 = vmov 0.0   ;;  %v95_v1 = vld [vmem:[#allocation5 + $0xf8] sm:$0xff]  ;;  %v94_v2 = vld [vmem:[#allocation5 + $0xf0] sm:$0xff] }
  0x29   :  { %160 = vmatprep.mubr.f32.mxu0 %v463_v0  ;;  %v93_v3 = vld [vmem:[#allocation5 + $0xe8] sm:$0xff]  ;;  %96 = vmatprep.subr.mxu0 %v95_v1  ;;  %v92_v4 = vld [vmem:[#allocation5 + $0xe0] sm:$0xff]  ;;  %v91_v5 = vld [vmem:[#allocation5 + $0xd8] sm:$0xff] }
  0x2a   :  { %97 = vmatpush1.msra.mxu0 %v94_v2  ;;  %v90_v6 = vld [vmem:[#allocation5 + $0xd0] sm:$0xff]  ;;  %v89_v7 = vld [vmem:[#allocation5 + $0xc8] sm:$0xff]  ;;  %v88_v8 = vld [vmem:[#allocation5 + $0xc0] sm:$0xff] }
  0x2b   :  { %98 = vmatprep.subr.mxu0 %v93_v3  ;;  %v87_v9 = vld [vmem:[#allocation5 + $0xb8] sm:$0xff]  ;;  %v86_v10 = vld [vmem:[#allocation5 + $0xb0] sm:$0xff]  ;;  %v85_v11 = vld [vmem:[#allocation5 + $0xa8] sm:$0xff] }
  0x2c   :  { %99 = vmatpush1.msra.mxu0 %v92_v4  ;;  %v84_v12 = vld [vmem:[#allocation5 + $0xa0] sm:$0xff]  ;;  %v83_v13 = vld [vmem:[#allocation5 + $0x98] sm:$0xff]  ;;  %v82_v14 = vld [vmem:[#allocation5 + $0x90] sm:$0xff] }
  0x2d   :  { %100 = vmatprep.subr.mxu0 %v91_v5  ;;  %v199_v15 = vld [vmem:[#allocation7 + $0x78] sm:$0xff]  ;;  %v198_v16 = vld [vmem:[#allocation7 + $0x70] sm:$0xff]  ;;  %v81_v17 = vld [vmem:[#allocation5 + $0x88] sm:$0xff] }
  0x2e   :  { %101 = vmatpush1.msra.mxu0 %v90_v6  ;;  %326 = vmatprep.subr.mxu1 %v199_v15  ;;  %v80_v18 = vld [vmem:[#allocation5 + $0x80] sm:$0xff]  ;;  %v197_v19 = vld [vmem:[#allocation7 + $0x68] sm:$0xff]  ;;  %v79_v20 = vld [vmem:[#allocation5 + $0x78] sm:$0xff] }
  0x2f   :  { %102 = vmatprep.subr.mxu0 %v89_v7  ;;  %327 = vmatpush3.msra.mxu1 %v199_v15  ;;  %v78_v21 = vld [vmem:[#allocation5 + $0x70] sm:$0xff]  ;;  %v196_v22 = vld [vmem:[#allocation7 + $0x60] sm:$0xff]  ;;  %v77_v23 = vld [vmem:[#allocation5 + $0x68] sm:$0xff] }
  0x30   :  { %103 = vmatpush1.msra.mxu0 %v88_v8  ;;  %328 = vmatprep.subr.mxu1 %v198_v16  ;;  %v76_v24 = vld [vmem:[#allocation5 + $0x60] sm:$0xff]  ;;  %v195_v25 = vld [vmem:[#allocation7 + $0x58] sm:$0xff]  ;;  %v74_v27 = vld [vmem:[#allocation5 + $0x50] sm:$0xff] }
  0x31   :  { %104 = vmatprep.subr.mxu0 %v87_v9  ;;  %329 = vmatpush3.msra.mxu1 %v198_v16  ;;  %v75_v26 = vld [vmem:[#allocation5 + $0x58] sm:$0xff]  ;;  %v194_v28 = vld [vmem:[#allocation7 + $0x50] sm:$0xff]  ;;  %v73_v29 = vld [vmem:[#allocation5 + $0x48] sm:$0xff] }
  0x32   :  { %105 = vmatpush1.msra.mxu0 %v86_v10  ;;  %330 = vmatprep.subr.mxu1 %v197_v19  ;;  %v72_v30 = vld [vmem:[#allocation5 + $0x40] sm:$0xff]  ;;  %v193_v31 = vld [vmem:[#allocation7 + $0x48] sm:$0xff]  ;;  %v71_v32 = vld [vmem:[#allocation5 + $0x38] sm:$0xff] }
  0x33   :  { %106 = vmatprep.subr.mxu0 %v85_v11  ;;  %331 = vmatpush3.msra.mxu1 %v197_v19  ;;  %v70_v33 = vld [vmem:[#allocation5 + $0x30] sm:$0xff]  ;;  %v192_v34 = vld [vmem:[#allocation7 + $0x40] sm:$0xff]  ;;  %v69_v35 = vld [vmem:[#allocation5 + $0x28] sm:$0xff] }
  0x34   :  { %107 = vmatpush1.msra.mxu0 %v84_v12  ;;  %332 = vmatprep.subr.mxu1 %v196_v22  ;;  %v68_v36 = vld [vmem:[#allocation5 + $0x20] sm:$0xff]  ;;  %v191_v37 = vld [vmem:[#allocation7 + $0x38] sm:$0xff]  ;;  %v66_v39 = vld [vmem:[#allocation5 + $0x10] sm:$0xff] }
  0x35   :  { %108 = vmatprep.subr.mxu0 %v83_v13  ;;  %333 = vmatpush3.msra.mxu1 %v196_v22  ;;  %v67_v38 = vld [vmem:[#allocation5 + $0x18] sm:$0xff]  ;;  %v190_v40 = vld [vmem:[#allocation7 + $0x30] sm:$0xff]  ;;  %v65_v41 = vld [vmem:[#allocation5 + $0x8] sm:$0xff] }
  0x36   :  { %109 = vmatpush1.msra.mxu0 %v82_v14  ;;  %334 = vmatprep.subr.mxu1 %v195_v25  ;;  %v64_v42 = vld [vmem:[#allocation5] sm:$0xff]  ;;  %v189_v43 = vld [vmem:[#allocation7 + $0x28] sm:$0xff]  ;;  %v62_v44 = vld [vmem:[#allocation2] sm:$0xff] }
  0x37   :  { %110 = vmatprep.subr.mxu0 %v81_v17  ;;  %335 = vmatpush3.msra.mxu1 %v195_v25  ;;  %v188_v45 = vld [vmem:[#allocation7 + $0x20] sm:$0xff]  ;;  %v63_v46 = vld [vmem:[#allocation2 + $0x8] sm:$0xff]  ;;  %v186_v48 = vld [vmem:[#allocation7 + $0x10] sm:$0xff] }
  0x38   :  { %111 = vmatpush1.msra.mxu0 %v80_v18  ;;  %336 = vmatprep.subr.mxu1 %v194_v28  ;;  %v187_v47 = vld [vmem:[#allocation7 + $0x18] sm:$0xff]  ;;  %v185_v49 = vld [vmem:[#allocation7 + $0x8] sm:$0xff]  ;;  %v184_v50 = vld [vmem:[#allocation7] sm:$0xff] }
  0x39   :  { %112 = vmatprep.subr.mxu0 %v79_v20  ;;  %337 = vmatpush3.msra.mxu1 %v194_v28  ;;  %v306_v51 = vld [vmem:[%s526_s2] ss:$0 sm:$0xff]  ;;  %s464_s2 = smov [#allocation8]  }
  0x3a   :  { %113 = vmatpush1.msra.mxu0 %v78_v21  ;;  %338 = vmatprep.subr.mxu1 %v193_v31  ;;  %v307_v61 = vld [vmem:[%s528_s4] ss:$0 sm:$0xff]  ;;  %s293_s13 = sshll.u32 %s464_s2, 4  ;;  %s294_s13 = int_to_ptr.vmem [resolvable:$true] %s293_s13 }
  0x3b   :  { %114 = vmatprep.subr.mxu0 %v77_v23  ;;  %339 = vmatpush3.msra.mxu1 %v193_v31  ;;  %s430_s14 = scalar_lea.vmem %s294_s13, 256  ;;  %p435_p2 = scmp.lt.s32.totalorder %s294_s13, %s294_s13 }
  0x3c   :  { %115 = vmatpush1.msra.mxu0 %v76_v24  ;;  %340 = vmatprep.subr.mxu1 %v192_v34  ;;  %p431_p1 = scmp.ne.s32.totalorder %s294_s13, %s430_s14  ;;  %p436_p3 = scmp.lt.s32.totalorder %s430_s14, %s430_s14 }
  0x3d   :  { %116 = vmatprep.subr.mxu0 %v75_v26  ;;  %341 = vmatpush3.msra.mxu1 %v192_v34 }
  0x3e   :  { %117 = vmatpush1.msra.mxu0 %v74_v27  ;;  %342 = vmatprep.subr.mxu1 %v191_v37  ;;  %p437_p4 = por %p436_p3, %p435_p2 }
  0x3f   :  { %118 = vmatprep.subr.mxu0 %v73_v29  ;;  %343 = vmatpush3.msra.mxu1 %v191_v37 }
  0x40   :  { %119 = vmatpush1.msra.mxu0 %v72_v30  ;;  %344 = vmatprep.subr.mxu1 %v190_v40  ;;  %p438_p5 = pnand %p437_p4, %p431_p1 }
  0x41   :  { %120 = vmatprep.subr.mxu0 %v71_v32  ;;  %345 = vmatpush3.msra.mxu1 %v190_v40 }
  0x42   :  { %121 = vmatpush1.msra.mxu0 %v70_v33  ;;  %346 = vmatprep.subr.mxu1 %v189_v43 }
  0x43   :  { %122 = vmatprep.subr.mxu0 %v69_v35  ;;  %347 = vmatpush3.msra.mxu1 %v189_v43 }
  0x44   :  { %123 = vmatpush1.msra.mxu0 %v68_v36  ;;  %348 = vmatprep.subr.mxu1 %v188_v45 }
  0x45   :  { %124 = vmatprep.subr.mxu0 %v67_v38  ;;  %349 = vmatpush3.msra.mxu1 %v188_v45 }
  0x46   :  { %125 = vmatpush1.msra.mxu0 %v66_v39  ;;  %350 = vmatprep.subr.mxu1 %v187_v47 }
  0x47   :  { %126 = vmatprep.subr.mxu0 %v65_v41  ;;  %351 = vmatpush3.msra.mxu1 %v187_v47 }
  0x48   :  { %127 = vmatpush1.msra.mxu0 %v64_v42  ;;  %352 = vmatprep.subr.mxu1 %v186_v48 }
  0x49   :  { %161 = vmatmul.mubr.f32.vlgmr.msra.gmra.mxu0 %v62_v44  ;;  %353 = vmatpush3.msra.mxu1 %v186_v48 }
  0x4a   :  { %166 = vmatprep.mubr.f32.mxu0 %v463_v0  ;;  %354 = vmatprep.subr.mxu1 %v185_v49 }
  0x4b   :  { %355 = vmatpush3.msra.mxu1 %v185_v49 }
  0x4c   :  { %356 = vmatprep.subr.mxu1 %v184_v50 }
  0x4d   :  { %167 = vmatmul.mubr.f32.gmra.mxu0 %v63_v46  ;;  %357 = vmatpush3.msra.mxu1 %v184_v50 }
 0x109   :  { %v162_v52 = vpop.f32.mrf.mxu0 }
 0x10a   :  { %v180_v53 = vadd.f32 %v306_v51, %v162_v52 }
 0x10b   :  { %v164_v54 = vpop.f32.mrf.mxu0 }
 0x10c   :  { %v182_v55 = vmax.f32 %v180_v53, 0.0 }
 0x10d   :  { %v168_v56 = vpop.f32.mrf.mxu0 }
 0x10e   :  { %v181_v57 = vadd.f32 %v306_v51, %v168_v56  ;;  %358 = vmatprep.mubr.f32.mxu1 %v182_v55 }
 0x10f   :  { %v170_v59 = vpop.f32.mrf.mxu0 }
 0x110   :  { %v183_v58 = vmax.f32 %v181_v57, 0.0 }
 0x112   :  { %359 = vmatmul.mubr.f32.vlgmr.msra.gmra.mxu1 %v183_v58 }
 0x1d2   :  { %v360_v60 = vpop.f32.mrf.mxu1 }
 0x1d3   :  { %v272_v62 = vadd.f32 %v360_v60, %v170_v59 }
 0x1d4   :  { %v266_v63 = vpop.f32.mrf.mxu1 }
 0x1d5   :  { %v283_v0 = vadd.f32 %v307_v61, %v272_v62  ;;  %v267_v1 = vadd.f32 %v266_v63, %v164_v54 }
 0x1d7   :  { %v285_v2 = vmax.f32 %v283_v0, 0.0  ;;  %v282_v3 = vadd.f32 %v307_v61, %v267_v1 }
 0x1d9   :  { %287 = vst [vmem:[#allocation8 + $0x8] sm:$0xff] %v285_v2  ;;  %v284_v4 = vmax.f32 %v282_v3, 0.0 }
 0x1db   :  { %286 = vst [vmem:[#allocation8] sm:$0xff] %v284_v4 }
 0x1dc   :  { %441 = shalt.err (!%p438_p5)
}
 0x1dd   :  { %299 = dma.vmem_to_hbm [thread:$0]  %s294_s13, 256, %s529_s5, [#allocation4], %s460_s28, %s460_s28, %s461_s29  }
 0x1de   :  { %454 = dma.done.wait [#allocation4], 256  }
 0x1df   :  { %455 = vsyncadd [#allocation4], 4294967040 }
 0x1e0   :  { %303 = vsyncpa [#allocation3], 1 }
 0x1e1   :  { %304 = vsyncpa [#allocation6], 1 }
 0x1e2   :  { %305 = vsyncpa [#allocation4], 1 }

// kernel: tpu_custom_call.1
= control target key start
LH: loop header
LB: loop body
LE: loop exit
PB: predicated region body
PF: predicated region fallthrough
CT: control target
= control target key end

     0   :  { %10 = vsyncpa [#allocation3], 0  ;;  %s524_s0 = inlined_call_operand.hbm [shape: f32[16,128], index: 0, kind: input, shape index: {}]   ;;  %s525_s1 = inlined_call_operand.hbm [shape: f32[128,256], index: 1, kind: input, shape index: {}]   ;;  %s526_s2 = inlined_call_operand.vmem [shape: f32[1,128], index: 2, kind: input, shape index: {}]   ;;  %s527_s3 = inlined_call_operand.hbm [shape: f32[128,128], index: 3, kind: input, shape index: {}]   ;;  %s528_s4 = inlined_call_operand.vmem [shape: f32[1,128], index: 4, kind: input, shape index: {}]   ;;  %s529_s5 = inlined_call_operand.hbm [shape: f32[16,128], index: 5, kind: output, shape index: {}]  }
   0x1   :  { %11 = vsyncpa [#allocation6], 0 }
   0x2   :  { %12 = vsyncpa [#allocation4], 0  ;;  %s456_s18 = smov [#allocation5]  }
   0x3   :  { %s30_s19 = sshll.u32 %s456_s18, 4  ;;  %s31_s19 = int_to_ptr.vmem [resolvable:$true] %s30_s19 }
   0x4   :  { %s378_s20 = scalar_lea.vmem %s31_s19, 4096  ;;  %p383_p1 = scmp.lt.s32.totalorder %s31_s19, %s31_s19 }
   0x5   :  { %p379_p0 = scmp.ne.s32.totalorder %s31_s19, %s378_s20  ;;  %p384_p2 = scmp.lt.s32.totalorder %s378_s20, %s378_s20 }
   0x7   :  { %p385_p3 = por %p384_p2, %p383_p1 }
   0x9   :  { %p386_p4 = pnand %p385_p3, %p379_p0 }
   0xb   :  { %389 = shalt.err (!%p386_p4)
}
   0xc   :  { %s457_s21 = smov 256   ;;  %s458_s22 = smov 16  }
   0xd   :  { %36 = dma.hbm_to_vmem [thread:$0]  %s525_s1, 4096, %s31_s19, [#allocation6], %s457_s21, %s457_s21, %s458_s22  }
   0xe   :  { %s459_s25 = smov [#allocation2]  }
   0xf   :  { %s18_s26 = sshll.u32 %s459_s25, 4  ;;  %s19_s26 = int_to_ptr.vmem [resolvable:$true] %s18_s26 }
  0x10   :  { %s398_s27 = scalar_lea.vmem %s19_s26, 256  ;;  %p403_p6 = scmp.lt.s32.totalorder %s19_s26, %s19_s26 }
  0x11   :  { %p399_p5 = scmp.ne.s32.totalorder %s19_s26, %s398_s27  ;;  %p404_p7 = scmp.lt.s32.totalorder %s398_s27, %s398_s27 }
  0x13   :  { %p405_p8 = por %p404_p7, %p403_p6 }
  0x15   :  { %p406_p9 = pnand %p405_p8, %p399_p5 }
  0x17   :  { %409 = shalt.err (!%p406_p9)
}
  0x18   :  { %s460_s28 = smov 128   ;;  %s461_s29 = smov 8  }
  0x19   :  { %24 = dma.hbm_to_vmem [thread:$0]  %s524_s0, 256, %s19_s26, [#allocation3], %s460_s28, %s460_s28, %s461_s29  }
  0x1a   :  { %s462_s1 = smov [#allocation7]  }
  0x1b   :  { %s44_s7 = sshll.u32 %s462_s1, 4  ;;  %s45_s7 = int_to_ptr.vmem [resolvable:$true] %s44_s7 }
  0x1c   :  { %s418_s8 = scalar_lea.vmem %s45_s7, 2048  ;;  %p423_p11 = scmp.lt.s32.totalorder %s45_s7, %s45_s7 }
  0x1d   :  { %p419_p10 = scmp.ne.s32.totalorder %s45_s7, %s418_s8  ;;  %p424_p12 = scmp.lt.s32.totalorder %s418_s8, %s418_s8 }
  0x1f   :  { %p425_p13 = por %p424_p12, %p423_p11 }
  0x21   :  { %p426_p0 = pnand %p425_p13, %p419_p10 }
  0x23   :  { %429 = shalt.err (!%p426_p0)
}
  0x24   :  { %50 = dma.hbm_to_vmem [thread:$0]  %s527_s3, 2048, %s45_s7, [#allocation6], %s460_s28, %s460_s28, %s461_s29  }
  0x25   :  { %450 = dma.done.wait [#allocation3], 256  }
  0x26   :  { %451 = vsyncadd [#allocation3], 4294967040 }
  0x27   :  { %452 = dma.done.wait [#allocation6], 6144  }
  0x28   :  { %453 = vsyncadd [#allocation6], 4294961152  ;;  %v463_v0 = vmov 0.0   ;;  %v95_v1 = vld [vmem:[#allocation5 + $0xf8] sm:$0xff]  ;;  %v94_v2 = vld [vmem:[#allocation5 + $0xf0] sm:$0xff] }
  0x29   :  { %160 = vmatprep.mubr.f32.mxu0 %v463_v0  ;;  %v93_v3 = vld [vmem:[#allocation5 + $0xe8] sm:$0xff]  ;;  %96 = vmatprep.subr.mxu0 %v95_v1  ;;  %v92_v4 = vld [vmem:[#allocation5 + $0xe0] sm:$0xff]  ;;  %v91_v5 = vld [vmem:[#allocation5 + $0xd8] sm:$0xff] }
  0x2a   :  { %97 = vmatpush1.msra.mxu0 %v94_v2  ;;  %v90_v6 = vld [vmem:[#allocation5 + $0xd0] sm:$0xff]  ;;  %v89_v7 = vld [vmem:[#allocation5 + $0xc8] sm:$0xff]  ;;  %v88_v8 = vld [vmem:[#allocation5 + $0xc0] sm:$0xff] }
  0x2b   :  { %98 = vmatprep.subr.mxu0 %v93_v3  ;;  %v87_v9 = vld [vmem:[#allocation5 + $0xb8] sm:$0xff]  ;;  %v86_v10 = vld [vmem:[#allocation5 + $0xb0] sm:$0xff]  ;;  %v85_v11 = vld [vmem:[#allocation5 + $0xa8] sm:$0xff] }
  0x2c   :  { %99 = vmatpush1.msra.mxu0 %v92_v4  ;;  %v84_v12 = vld [vmem:[#allocation5 + $0xa0] sm:$0xff]  ;;  %v83_v13 = vld [vmem:[#allocation5 + $0x98] sm:$0xff]  ;;  %v82_v14 = vld [vmem:[#allocation5 + $0x90] sm:$0xff] }
  0x2d   :  { %100 = vmatprep.subr.mxu0 %v91_v5  ;;  %v199_v15 = vld [vmem:[#allocation7 + $0x78] sm:$0xff]  ;;  %v198_v16 = vld [vmem:[#allocation7 + $0x70] sm:$0xff]  ;;  %v81_v17 = vld [vmem:[#allocation5 + $0x88] sm:$0xff] }
  0x2e   :  { %101 = vmatpush1.msra.mxu0 %v90_v6  ;;  %326 = vmatprep.subr.mxu1 %v199_v15  ;;  %v80_v18 = vld [vmem:[#allocation5 + $0x80] sm:$0xff]  ;;  %v197_v19 = vld [vmem:[#allocation7 + $0x68] sm:$0xff]  ;;  %v79_v20 = vld [vmem:[#allocation5 + $0x78] sm:$0xff] }
  0x2f   :  { %102 = vmatprep.subr.mxu0 %v89_v7  ;;  %327 = vmatpush3.msra.mxu1 %v199_v15  ;;  %v78_v21 = vld [vmem:[#allocation5 + $0x70] sm:$0xff]  ;;  %v196_v22 = vld [vmem:[#allocation7 + $0x60] sm:$0xff]  ;;  %v77_v23 = vld [vmem:[#allocation5 + $0x68] sm:$0xff] }
  0x30   :  { %103 = vmatpush1.msra.mxu0 %v88_v8  ;;  %328 = vmatprep.subr.mxu1 %v198_v16  ;;  %v76_v24 = vld [vmem:[#allocation5 + $0x60] sm:$0xff]  ;;  %v195_v25 = vld [vmem:[#allocation7 + $0x58] sm:$0xff]  ;;  %v74_v27 = vld [vmem:[#allocation5 + $0x50] sm:$0xff] }
  0x31   :  { %104 = vmatprep.subr.mxu0 %v87_v9  ;;  %329 = vmatpush3.msra.mxu1 %v198_v16  ;;  %v75_v26 = vld [vmem:[#allocation5 + $0x58] sm:$0xff]  ;;  %v194_v28 = vld [vmem:[#allocation7 + $0x50] sm:$0xff]  ;;  %v73_v29 = vld [vmem:[#allocation5 + $0x48] sm:$0xff] }
  0x32   :  { %105 = vmatpush1.msra.mxu0 %v86_v10  ;;  %330 = vmatprep.subr.mxu1 %v197_v19  ;;  %v72_v30 = vld [vmem:[#allocation5 + $0x40] sm:$0xff]  ;;  %v193_v31 = vld [vmem:[#allocation7 + $0x48] sm:$0xff]  ;;  %v71_v32 = vld [vmem:[#allocation5 + $0x38] sm:$0xff] }
  0x33   :  { %106 = vmatprep.subr.mxu0 %v85_v11  ;;  %331 = vmatpush3.msra.mxu1 %v197_v19  ;;  %v70_v33 = vld [vmem:[#allocation5 + $0x30] sm:$0xff]  ;;  %v192_v34 = vld [vmem:[#allocation7 + $0x40] sm:$0xff]  ;;  %v69_v35 = vld [vmem:[#allocation5 + $0x28] sm:$0xff] }
  0x34   :  { %107 = vmatpush1.msra.mxu0 %v84_v12  ;;  %332 = vmatprep.subr.mxu1 %v196_v22  ;;  %v68_v36 = vld [vmem:[#allocation5 + $0x20] sm:$0xff]  ;;  %v191_v37 = vld [vmem:[#allocation7 + $0x38] sm:$0xff]  ;;  %v66_v39 = vld [vmem:[#allocation5 + $0x10] sm:$0xff] }
  0x35   :  { %108 = vmatprep.subr.mxu0 %v83_v13  ;;  %333 = vmatpush3.msra.mxu1 %v196_v22  ;;  %v67_v38 = vld [vmem:[#allocation5 + $0x18] sm:$0xff]  ;;  %v190_v40 = vld [vmem:[#allocation7 + $0x30] sm:$0xff]  ;;  %v65_v41 = vld [vmem:[#allocation5 + $0x8] sm:$0xff] }
  0x36   :  { %109 = vmatpush1.msra.mxu0 %v82_v14  ;;  %334 = vmatprep.subr.mxu1 %v195_v25  ;;  %v64_v42 = vld [vmem:[#allocation5] sm:$0xff]  ;;  %v189_v43 = vld [vmem:[#allocation7 + $0x28] sm:$0xff]  ;;  %v62_v44 = vld [vmem:[#allocation2] sm:$0xff] }
  0x37   :  { %110 = vmatprep.subr.mxu0 %v81_v17  ;;  %335 = vmatpush3.msra.mxu1 %v195_v25  ;;  %v188_v45 = vld [vmem:[#allocation7 + $0x20] sm:$0xff]  ;;  %v63_v46 = vld [vmem:[#allocation2 + $0x8] sm:$0xff]  ;;  %v186_v48 = vld [vmem:[#allocation7 + $0x10] sm:$0xff] }
  0x38   :  { %111 = vmatpush1.msra.mxu0 %v80_v18  ;;  %336 = vmatprep.subr.mxu1 %v194_v28  ;;  %v187_v47 = vld [vmem:[#allocation7 + $0x18] sm:$0xff]  ;;  %v185_v49 = vld [vmem:[#allocation7 + $0x8] sm:$0xff]  ;;  %v184_v50 = vld [vmem:[#allocation7] sm:$0xff] }
  0x39   :  { %112 = vmatprep.subr.mxu0 %v79_v20  ;;  %337 = vmatpush3.msra.mxu1 %v194_v28  ;;  %v306_v51 = vld [vmem:[%s526_s2] ss:$0 sm:$0xff]  ;;  %s464_s2 = smov [#allocation8]  }
  0x3a   :  { %113 = vmatpush1.msra.mxu0 %v78_v21  ;;  %338 = vmatprep.subr.mxu1 %v193_v31  ;;  %v307_v61 = vld [vmem:[%s528_s4] ss:$0 sm:$0xff]  ;;  %s293_s13 = sshll.u32 %s464_s2, 4  ;;  %s294_s13 = int_to_ptr.vmem [resolvable:$true] %s293_s13 }
  0x3b   :  { %114 = vmatprep.subr.mxu0 %v77_v23  ;;  %339 = vmatpush3.msra.mxu1 %v193_v31  ;;  %s430_s14 = scalar_lea.vmem %s294_s13, 256  ;;  %p435_p2 = scmp.lt.s32.totalorder %s294_s13, %s294_s13 }
  0x3c   :  { %115 = vmatpush1.msra.mxu0 %v76_v24  ;;  %340 = vmatprep.subr.mxu1 %v192_v34  ;;  %p431_p1 = scmp.ne.s32.totalorder %s294_s13, %s430_s14  ;;  %p436_p3 = scmp.lt.s32.totalorder %s430_s14, %s430_s14 }
  0x3d   :  { %116 = vmatprep.subr.mxu0 %v75_v26  ;;  %341 = vmatpush3.msra.mxu1 %v192_v34 }
  0x3e   :  { %117 = vmatpush1.msra.mxu0 %v74_v27  ;;  %342 = vmatprep.subr.mxu1 %v191_v37  ;;  %p437_p4 = por %p436_p3, %p435_p2 }
  0x3f   :  { %118 = vmatprep.subr.mxu0 %v73_v29  ;;  %343 = vmatpush3.msra.mxu1 %v191_v37 }
  0x40   :  { %119 = vmatpush1.msra.mxu0 %v72_v30  ;;  %344 = vmatprep.subr.mxu1 %v190_v40  ;;  %p438_p5 = pnand %p437_p4, %p431_p1 }
  0x41   :  { %120 = vmatprep.subr.mxu0 %v71_v32  ;;  %345 = vmatpush3.msra.mxu1 %v190_v40 }
  0x42   :  { %121 = vmatpush1.msra.mxu0 %v70_v33  ;;  %346 = vmatprep.subr.mxu1 %v189_v43 }
  0x43   :  { %122 = vmatprep.subr.mxu0 %v69_v35  ;;  %347 = vmatpush3.msra.mxu1 %v189_v43 }
  0x44   :  { %123 = vmatpush1.msra.mxu0 %v68_v36  ;;  %348 = vmatprep.subr.mxu1 %v188_v45 }
  0x45   :  { %124 = vmatprep.subr.mxu0 %v67_v38  ;;  %349 = vmatpush3.msra.mxu1 %v188_v45 }
  0x46   :  { %125 = vmatpush1.msra.mxu0 %v66_v39  ;;  %350 = vmatprep.subr.mxu1 %v187_v47 }
  0x47   :  { %126 = vmatprep.subr.mxu0 %v65_v41  ;;  %351 = vmatpush3.msra.mxu1 %v187_v47 }
  0x48   :  { %127 = vmatpush1.msra.mxu0 %v64_v42  ;;  %352 = vmatprep.subr.mxu1 %v186_v48 }
  0x49   :  { %161 = vmatmul.mubr.f32.vlgmr.msra.gmra.mxu0 %v62_v44  ;;  %353 = vmatpush3.msra.mxu1 %v186_v48 }
  0x4a   :  { %166 = vmatprep.mubr.f32.mxu0 %v463_v0  ;;  %354 = vmatprep.subr.mxu1 %v185_v49 }
  0x4b   :  { %355 = vmatpush3.msra.mxu1 %v185_v49 }
  0x4c   :  { %356 = vmatprep.subr.mxu1 %v184_v50 }
  0x4d   :  { %167 = vmatmul.mubr.f32.gmra.mxu0 %v63_v46  ;;  %357 = vmatpush3.msra.mxu1 %v184_v50 }
 0x109   :  { %v162_v52 = vpop.f32.mrf.mxu0 }
 0x10a   :  { %v180_v53 = vadd.f32 %v306_v51, %v162_v52 }
 0x10b   :  { %v164_v54 = vpop.f32.mrf.mxu0 }
 0x10c   :  { %v182_v55 = vmax.f32 %v180_v53, 0.0 }
 0x10d   :  { %v168_v56 = vpop.f32.mrf.mxu0 }
 0x10e   :  { %v181_v57 = vadd.f32 %v306_v51, %v168_v56  ;;  %358 = vmatprep.mubr.f32.mxu1 %v182_v55 }
 0x10f   :  { %v170_v59 = vpop.f32.mrf.mxu0 }
 0x110   :  { %v183_v58 = vmax.f32 %v181_v57, 0.0 }
 0x112   :  { %359 = vmatmul.mubr.f32.vlgmr.msra.gmra.mxu1 %v183_v58 }
 0x1d2   :  { %v360_v60 = vpop.f32.mrf.mxu1 }
 0x1d3   :  { %v272_v62 = vadd.f32 %v360_v60, %v170_v59 }
 0x1d4   :  { %v266_v63 = vpop.f32.mrf.mxu1 }
 0x1d5   :  { %v283_v0 = vadd.f32 %v307_v61, %v272_v62  ;;  %v267_v1 = vadd.f32 %v266_v63, %v164_v54 }
 0x1d7   :  { %v285_v2 = vmax.f32 %v283_v0, 0.0  ;;  %v282_v3 = vadd.f32 %v307_v61, %v267_v1 }
 0x1d9   :  { %287 = vst [vmem:[#allocation8 + $0x8] sm:$0xff] %v285_v2  ;;  %v284_v4 = vmax.f32 %v282_v3, 0.0 }
 0x1db   :  { %286 = vst [vmem:[#allocation8] sm:$0xff] %v284_v4 }
 0x1dc   :  { %441 = shalt.err (!%p438_p5)
}
 0x1dd   :  { %299 = dma.vmem_to_hbm [thread:$0]  %s294_s13, 256, %s529_s5, [#allocation4], %s460_s28, %s460_s28, %s461_s29  }
 0x1de   :  { %454 = dma.done.wait [#allocation4], 256  }
 0x1df   :  { %455 = vsyncadd [#allocation4], 4294967040 }
 0x1e0   :  { %303 = vsyncpa [#allocation3], 1 }
 0x1e1   :  { %304 = vsyncpa [#allocation6], 1 }
 0x1e2   :  { %305 = vsyncpa [#allocation4], 1 }

</bundles_post_ra>
